<compile_context>
chip_gen: v7x
topology: tpu7x:2x2x1
jax: 0.10.0
libtpu: 0.0.40
codegen_flags: <defaults>
</compile_context>

<pallas_src>
import numpy as np
import jax
import jax.numpy as jnp
from jax.experimental import pallas as pl
from jax.experimental.pallas import tpu as pltpu


# ----------------------------------------------------------------------------
# Graph construction (CPU glue, faithful to the reference build_graph).
# ----------------------------------------------------------------------------
def build_graph(sentences, word_embedding, window_size=3, weighted_graph=False,
                word_unique=True):
    adjs, features = [], []
    for sentence in sentences:
        sentence = list(sentence)
        words = list(set(sentence)) if word_unique else sentence
        word_to_inds = {words[i]: i for i in range(len(words))}
        windows = (sentence[i:i + window_size] if len(sentence) > window_size
                   else sentence
                   for i in range(len(sentence) - window_size + 1))
        pair_count = {}
        for window in windows:
            for p in range(1, len(window)):
                for q in range(0, p):
                    if word_unique and window[p] == window[q]:
                        continue
                    pair = (window[p], window[q])
                    pair_count[pair] = pair_count.get(pair, 0.0) + 1.0
                    pair = (window[q], window[p])
                    pair_count[pair] = pair_count.get(pair, 0.0) + 1.0
        n = len(words)
        adj = np.zeros((n, n), dtype=np.float32)
        for (p, q), cnt in pair_count.items():
            adj[word_to_inds[p], word_to_inds[q]] += (cnt if weighted_graph else 1.0)
        feature = np.stack([word_embedding[int(v)] for v in words], axis=0)
        adjs.append(adj)
        features.append(feature)
    return adjs, features


# TODO(synk): preprocess_adjs / preprocess_features are not provided in the
# reference; replaced by zero-padding to a common node count + validity mask.
def pad_graphs(adjs, feats, feature_size, node_multiple=16):
    max_n = max(a.shape[0] for a in adjs)
    n_pad = ((max_n + node_multiple - 1) // node_multiple) * node_multiple
    B = len(adjs)
    adj_p = np.zeros((B, n_pad, n_pad), dtype=np.float32)
    feat_p = np.zeros((B, n_pad, feature_size), dtype=np.float32)
    mask_p = np.zeros((B, n_pad), dtype=np.float32)
    for b, (a, f) in enumerate(zip(adjs, feats)):
        n = a.shape[0]
        adj_p[b, :n, :n] = a
        feat_p[b, :n, :] = f
        mask_p[b, :n] = 1.0
    return adj_p, feat_p, mask_p


# ----------------------------------------------------------------------------
# Pallas kernel: masked readout (sublane reduce) + classification head + softmax.
# ----------------------------------------------------------------------------
def _head_kernel(feat_ref, w1_ref, b1_ref, w2_ref, b2_ref, prob_ref):
    # TODO(synk): ResGatedGNN / ResGCN layers are not provided in the reference
    # module code; the GNN message passing is therefore not reproduced and the
    # adjacency is built but not consumed — this masked readout feeds the
    # classifier directly.

    # Masked sum-pool over nodes. The node-validity mask was pre-multiplied
    # into feat in the wrapper, so the pool is a plain sublane/XLU reduce over
    # the node axis (no sel matmul, no extra HBM traffic).
    pooled = jnp.sum(feat_ref[...].astype(jnp.float32), axis=1)        # (bb, F) f32

    # PredictionClassification.dense : Dropout(id) -> Linear(F, H) -> Tanh
    h = jnp.tanh(
        jnp.dot(pooled.astype(jnp.bfloat16), w1_ref[...],
                preferred_element_type=jnp.float32) + b1_ref[...])      # (bb, H) f32

    # PredictionClassification.out_proj : Dropout(id) -> Linear(H, Cp)
    # (padded class columns carry f32 bias -1e30 so they vanish in the softmax)
    logits = (jnp.dot(h.astype(jnp.bfloat16), w2_ref[...],
                      preferred_element_type=jnp.float32)
              + b2_ref[...])                                            # (bb, Cp)

    # nn.Softmax(dim=1) over the (padded, lane-dense) class axis.
    mx = jnp.max(logits, axis=1, keepdims=True)
    e = jnp.exp(logits - mx)
    denom = jnp.sum(e, axis=1, keepdims=True)
    prob_ref[...] = e * pl.reciprocal(denom, approx=True)


def _make_spec(shape, index_map, buffers=None):
    """BlockSpec helper; applies pipeline_mode=pl.Buffered(k) when supported."""
    if buffers is not None:
        try:
            return pl.BlockSpec(shape, index_map,
                                pipeline_mode=pl.Buffered(buffers))
        except Exception:
            pass  # older/newer API without pipeline_mode: fall back to default
    return pl.BlockSpec(shape, index_map)


def _vmem_budget_bytes():
    """~65% of physical VMEM (≈42 MiB on v7x, ≈83 MiB on v5e/v6e)."""
    try:
        cap = int(pltpu.get_tpu_info().vmem_capacity_bytes)
    except Exception:
        cap = 64 << 20  # conservative: assume v7x-sized physical VMEM
    return int(cap * 0.65)


def _auto_block_b(B, N, F, Cp, w_bytes, budget_bytes, feat_buffers):
    """Largest multiple-of-8 batch tile whose working set fits the budget,
    capped so the grid keeps >=2 steps when the batch allows (v7x megacore)."""
    nbuf = feat_buffers if feat_buffers is not None else 2

    def fits(bb):
        feat_tile = nbuf * bb * N * F * 2          # bf16 feat stream
        out_tile = 2 * bb * Cp * 4                 # f32 output (double-buffered)
        return feat_tile + out_tile + w_bytes <= budget_bytes

    cap = B // 2 if B >= 16 else B                 # keep >=2 grid steps if possible
    bb = max(8, (cap // 8) * 8)
    while bb > 8 and not fits(bb):
        bb -= 8
    return bb


def regvd_head(feat, mask, w1, b1, w2, b2, *, block_b=None, min_out_lanes=128,
               feat_buffers=None):
    """feat: (B, N, F) f32, mask: (B, N) f32. Returns (B, C) f32 probabilities."""
    B, N, F = feat.shape
    H = w1.shape[1]
    C = w2.shape[1]

    # Lane-dense output slab: pad classes up to a multiple of 128 lanes; padded
    # classes get bias -1e30 (f32!) and zero weight columns -> exp() -> 0.
    Cp = max(min_out_lanes, ((C + 127) // 128) * 128)
    w2_p = jnp.pad(w2, ((0, 0), (0, Cp - C)))
    b2_p = jnp.pad(b2, ((0, 0), (0, Cp - C)), constant_values=-1e30)

    # Resident-weight VMEM footprint (single-buffered via Buffered(1)).
    w_bytes = F * H * 2 + H * 4 + H * Cp * 2 + Cp * 4

    budget = _vmem_budget_bytes()
    if block_b is None:
        block_b = _auto_block_b(B, N, F, Cp, w_bytes, budget, feat_buffers)

    # Pad batch to a multiple of the batch tile.
    Bp = pl.cdiv(B, block_b) * block_b
    if Bp != B:
        feat = jnp.pad(feat, ((0, Bp - B), (0, 0), (0, 0)))
        mask = jnp.pad(mask, ((0, Bp - B), (0, 0)))
    num_tiles = Bp // block_b

    # Pre-multiply the node mask into the features (wrapper-side, fused into
    # the bf16 cast by XLA) so the in-kernel pool is a plain sum over nodes.
    feat_m = (feat * mask[:, :, None]).astype(jnp.bfloat16)            # (Bp, N, F)

    w1_b = w1.astype(jnp.bfloat16)
    w2_b = w2_p.astype(jnp.bfloat16)
    # b1 / b2 stay f32 (b2 carries the -1e30 pad; would overflow in bf16).

    # Explicit VMEM limit: above the 16/32 MiB scoped defaults, under physical.
    nbuf = feat_buffers if feat_buffers is not None else 2
    needed = (nbuf * block_b * N * F * 2 + 2 * block_b * Cp * 4 + w_bytes)
    vmem_limit = int(min(budget, max(needed * 2, 32 << 20)))

    prob_pad = pl.pallas_call(
        _head_kernel,
        out_shape=jax.ShapeDtypeStruct((Bp, Cp), jnp.float32),
        grid=(num_tiles,),
        in_specs=[
            # Streamed, premasked feature tile (default double-buffered;
            # sweep feat_buffers=3 only if xprof shows exposed DMA).
            _make_spec((block_b, N, F), lambda i: (i, 0, 0), feat_buffers),
            # VMEM-resident weights: constant index_map + single-buffered.
            _make_spec((F, H), lambda i: (0, 0), 1),
            _make_spec((1, H), lambda i: (0, 0), 1),
            _make_spec((H, Cp), lambda i: (0, 0), 1),
            _make_spec((1, Cp), lambda i: (0, 0), 1),
        ],
        out_specs=pl.BlockSpec((block_b, Cp), lambda i: (i, 0)),
        compiler_params=pltpu.CompilerParams(
            dimension_semantics=("parallel",),          # both TCs on v7x
            vmem_limit_bytes=vmem_limit),
    )(feat_m, w1_b, b1, w2_b, b2_p)

    return prob_pad[:B, :C]


# ----------------------------------------------------------------------------
# End-to-end ReGVD-style forward (labels=None branch).
# ----------------------------------------------------------------------------
def regvd_forward(token_ids_np, w_embeddings_np, params, window_size=5,
                  block_b=None):
    adjs, feats = build_graph(token_ids_np, w_embeddings_np,
                              window_size=window_size)
    _adj, feat_p, mask_p = pad_graphs(adjs, feats, w_embeddings_np.shape[1])
    prob = regvd_head(jnp.asarray(feat_p, dtype=jnp.float32),
                      jnp.asarray(mask_p, dtype=jnp.float32),
                      params["w1"], params["b1"],
                      params["w2"], params["b2"],
                      block_b=block_b)
    return prob


if __name__ == "__main__":
    # Small, forward-consistent, lane-friendly shapes.
    batch = 16            # auto block_b -> 8, grid=(2,) (both TCs on v7x)
    seq_len = 8
    vocab = 32
    feature_size = 128    # stands in for RoBERTa embedding dim (768)
    hidden_size = 128     # classification-head hidden dim (256 in the paper)
    num_classes = 2
    window_size = 5

    key = jax.random.PRNGKey(0)
    k_emb, k_tok, k_w1, k_b1, k_w2, k_b2 = jax.random.split(key, 6)

    w_embeddings = np.asarray(
        jax.random.normal(k_emb, (vocab, feature_size), dtype=jnp.float32) * 0.1)
    token_ids = np.asarray(
        jax.random.randint(k_tok, (batch, seq_len), 0, vocab), dtype=np.int64)

    params = {
        "w1": jax.random.normal(k_w1, (feature_size, hidden_size),
                                dtype=jnp.float32) * 0.05,
        "b1": jax.random.normal(k_b1, (1, hidden_size),
                                dtype=jnp.float32) * 0.01,
        "w2": jax.random.normal(k_w2, (hidden_size, num_classes),
                                dtype=jnp.float32) * 0.05,
        "b2": jax.random.normal(k_b2, (1, num_classes),
                                dtype=jnp.float32) * 0.01,
    }

    prob = regvd_forward(token_ids, w_embeddings, params,
                         window_size=window_size)
    prob = jax.block_until_ready(prob)

    # Pure-JAX f32 reference of the same forward path (for validation).
    adjs, feats = build_graph(token_ids, w_embeddings, window_size=window_size)
    _adj, feat_p, mask_p = pad_graphs(adjs, feats, feature_size)
    feat_j = jnp.asarray(feat_p, dtype=jnp.float32)
    mask_j = jnp.asarray(mask_p, dtype=jnp.float32)
    pooled = jnp.sum(feat_j * mask_j[:, :, None], axis=1)
    h_ref = jnp.tanh(pooled @ params["w1"] + params["b1"])
    logits_ref = h_ref @ params["w2"] + params["b2"]
    prob_ref = jax.nn.softmax(logits_ref, axis=1)

    assert prob.shape == (batch, num_classes)
    assert bool(jnp.all(jnp.isfinite(prob)))
    assert bool(jnp.allclose(jnp.sum(prob, axis=1), 1.0, atol=5e-3))
    assert bool(jnp.allclose(prob, prob_ref, atol=2e-2))
    print("KERNEL_OK")
</pallas_src>

<mosaic_0001>
module attributes {stable_mosaic.version = 11 : i64} {
  func.func @_head_kernel(%arg0: i32, %arg1: memref<8x16x128xbf16, #tpu.memory_space<vmem>>, %arg2: memref<128x128xbf16, #tpu.memory_space<vmem>>, %arg3: memref<1x128xf32, #tpu.memory_space<vmem>>, %arg4: memref<128x128xbf16, #tpu.memory_space<vmem>>, %arg5: memref<1x128xf32, #tpu.memory_space<vmem>>, %arg6: memref<8x128xf32, #tpu.memory_space<vmem>>) attributes {dimension_semantics = [#tpu.dimension_semantics<parallel>], iteration_bounds = array<i64: 2>, scalar_prefetch = 0 : i64, scratch_operands = 0 : i64, tpu.core_type = #tpu.core_type<tc>, window_params = [{transform_indices = @transform_0, window_bounds = array<i64: 8, 16, 128>}, {pipeline_mode = #tpu.pipeline_mode<synchronous>, transform_indices = @transform_1, window_bounds = array<i64: 128, 128>}, {pipeline_mode = #tpu.pipeline_mode<synchronous>, transform_indices = @transform_2, window_bounds = array<i64: 1, 128>}, {pipeline_mode = #tpu.pipeline_mode<synchronous>, transform_indices = @transform_3, window_bounds = array<i64: 128, 128>}, {pipeline_mode = #tpu.pipeline_mode<synchronous>, transform_indices = @transform_4, window_bounds = array<i64: 1, 128>}, {transform_indices = @transform_5, window_bounds = array<i64: 8, 128>}]} {
    %c0 = arith.constant 0 : index
    %c0_0 = arith.constant 0 : index
    %c0_1 = arith.constant 0 : index
    %0 = vector.load %arg1[%c0, %c0_0, %c0_1] : memref<8x16x128xbf16, #tpu.memory_space<vmem>>, vector<8x16x128xbf16>
    %1 = arith.extf %0 : vector<8x16x128xbf16> to vector<8x16x128xf32>
    %cst = arith.constant dense<0.000000e+00> : vector<8x128xf32>
    %2 = vector.multi_reduction <add>, %1, %cst [1] : vector<8x16x128xf32> to vector<8x128xf32>
    %3 = arith.truncf %2 : vector<8x128xf32> to vector<8x128xbf16>
    %c0_2 = arith.constant 0 : index
    %c0_3 = arith.constant 0 : index
    %4 = vector.load %arg2[%c0_2, %c0_3] : memref<128x128xbf16, #tpu.memory_space<vmem>>, vector<128x128xbf16>
    %cst_4 = arith.constant dense<0.000000e+00> : vector<8x128xf32>
    %5 = tpu.matmul %3, %4, %cst_4 {dimension_numbers = #tpu.dot_dimension_numbers<[1], [0], [0], [1], [0, 0, 1, 1], [], []>} : vector<8x128xbf16>, vector<128x128xbf16>, vector<8x128xf32> -> vector<8x128xf32>
    %c0_5 = arith.constant 0 : index
    %c0_6 = arith.constant 0 : index
    %6 = vector.load %arg3[%c0_5, %c0_6] : memref<1x128xf32, #tpu.memory_space<vmem>>, vector<1x128xf32>
    %7 = vector.broadcast %6 : vector<1x128xf32> to vector<8x128xf32>
    %8 = arith.addf %5, %7 : vector<8x128xf32>
    %9 = math.tanh %8 : vector<8x128xf32>
    %10 = arith.truncf %9 : vector<8x128xf32> to vector<8x128xbf16>
    %c0_7 = arith.constant 0 : index
    %c0_8 = arith.constant 0 : index
    %11 = vector.load %arg4[%c0_7, %c0_8] : memref<128x128xbf16, #tpu.memory_space<vmem>>, vector<128x128xbf16>
    %cst_9 = arith.constant dense<0.000000e+00> : vector<8x128xf32>
    %12 = tpu.matmul %10, %11, %cst_9 {dimension_numbers = #tpu.dot_dimension_numbers<[1], [0], [0], [1], [0, 0, 1, 1], [], []>} : vector<8x128xbf16>, vector<128x128xbf16>, vector<8x128xf32> -> vector<8x128xf32>
    %c0_10 = arith.constant 0 : index
    %c0_11 = arith.constant 0 : index
    %13 = vector.load %arg5[%c0_10, %c0_11] : memref<1x128xf32, #tpu.memory_space<vmem>>, vector<1x128xf32>
    %14 = vector.broadcast %13 : vector<1x128xf32> to vector<8x128xf32>
    %15 = arith.addf %12, %14 : vector<8x128xf32>
    %cst_12 = arith.constant dense<0xFF800000> : vector<8xf32>
    %16 = vector.multi_reduction <maximumf>, %15, %cst_12 [1] : vector<8x128xf32> to vector<8xf32>
    %17 = vector.shape_cast %16 : vector<8xf32> to vector<8x1xf32>
    %18 = vector.broadcast %17 : vector<8x1xf32> to vector<8x128xf32>
    %19 = arith.subf %15, %18 : vector<8x128xf32>
    %20 = math.exp %19 : vector<8x128xf32>
    %cst_13 = arith.constant dense<0.000000e+00> : vector<8xf32>
    %21 = vector.multi_reduction <add>, %20, %cst_13 [1] : vector<8x128xf32> to vector<8xf32>
    %22 = vector.shape_cast %21 : vector<8xf32> to vector<8x1xf32>
    %23 = tpu.reciprocal %22 {approx = true} : vector<8x1xf32> -> vector<8x1xf32>
    %24 = vector.broadcast %23 : vector<8x1xf32> to vector<8x128xf32>
    %25 = arith.mulf %20, %24 : vector<8x128xf32>
    %c0_14 = arith.constant 0 : index
    %c0_15 = arith.constant 0 : index
    %26 = vector.load %arg6[%c0_14, %c0_15] : memref<8x128xf32, #tpu.memory_space<vmem>>, vector<8x128xf32>
    tpu.vector_store %arg6[%c0_14, %c0_15], %25 {strides = array<i32>} : memref<8x128xf32, #tpu.memory_space<vmem>>, vector<8x128xf32>,
    return
  }
  func.func @transform_0(%arg0: i32) -> (i32, i32, i32) {
    %c0_i32 = arith.constant 0 : i32
    %c0_i32_0 = arith.constant 0 : i32
    %c0_i32_1 = arith.constant 0 : i32
    return %arg0, %c0_i32, %c0_i32_0 : i32, i32, i32
  }
  func.func @transform_1(%arg0: i32) -> (i32, i32) {
    %c0_i32 = arith.constant 0 : i32
    %c0_i32_0 = arith.constant 0 : i32
    %c0_i32_1 = arith.constant 0 : i32
    return %c0_i32, %c0_i32_0 : i32, i32
  }
  func.func @transform_2(%arg0: i32) -> (i32, i32) {
    %c0_i32 = arith.constant 0 : i32
    %c0_i32_0 = arith.constant 0 : i32
    %c0_i32_1 = arith.constant 0 : i32
    return %c0_i32, %c0_i32_0 : i32, i32
  }
  func.func @transform_3(%arg0: i32) -> (i32, i32) {
    %c0_i32 = arith.constant 0 : i32
    %c0_i32_0 = arith.constant 0 : i32
    %c0_i32_1 = arith.constant 0 : i32
    return %c0_i32, %c0_i32_0 : i32, i32
  }
  func.func @transform_4(%arg0: i32) -> (i32, i32) {
    %c0_i32 = arith.constant 0 : i32
    %c0_i32_0 = arith.constant 0 : i32
    %c0_i32_1 = arith.constant 0 : i32
    return %c0_i32, %c0_i32_0 : i32, i32
  }
  func.func @transform_5(%arg0: i32) -> (i32, i32) {
    %c0_i32 = arith.constant 0 : i32
    %c0_i32_0 = arith.constant 0 : i32
    return %arg0, %c0_i32 : i32, i32
  }
}

</mosaic_0001>

<bundles_post_ra>
// kernel: tpu_custom_call.1
= control target key start
LH: loop header
LB: loop body
LE: loop exit
PB: predicated region body
PF: predicated region fallthrough
CT: control target
= control target key end

     0   :  { %10 = vsyncpa [#allocation3], 0  ;;  %s1442_s0 = inlined_call_operand.hbm [shape: bf16[16,16,128], index: 0, kind: input, shape index: {}]   ;;  %s1443_s1 = inlined_call_operand.hbm [shape: bf16[128,128], index: 1, kind: input, shape index: {}]   ;;  %s1444_s2 = inlined_call_operand.vmem [shape: f32[1,128], index: 2, kind: input, shape index: {}]   ;;  %s1445_s3 = inlined_call_operand.hbm [shape: bf16[128,128], index: 3, kind: input, shape index: {}]   ;;  %s1446_s4 = inlined_call_operand.vmem [shape: f32[1,128], index: 4, kind: input, shape index: {}]   ;;  %s1447_s5 = inlined_call_operand.hbm [shape: f32[16,128], index: 5, kind: output, shape index: {}]  }
   0x1   :  { %12 = vsyncpa [#allocation3 + $0x1], 0 }
   0x2   :  { %13 = vsyncpa [#allocation6], 0 }
   0x3   :  { %14 = vsyncpa [#allocation4], 0 }
   0x4   :  { %16 = vsyncpa [#allocation4 + $0x1], 0  ;;  %s1164_s18 = smov 0   ;;  %s1166_s19 = smov 0  }
   0x5   :  { %s1168_s20 = smov 0   ;;  %s1170_s21 = smov 0  }
   0x6 LB: > { %s1185_s22 = sadd.s32 4294967295, %s1124_s21   ;;  %s740_s23 = sadd.s32 4294967294, %s1124_s21   ;;  %s1124_s21 = sphi %s1170_s21, %s1467_s21   ;;  %s1120_s20 = sphi %s1168_s20, %s1466_s20   ;;  %s1116_s19 = sphi %s1166_s19, %s1465_s19   ;;  %s1112_s18 = sphi %s1164_s18, %s1464_s18  }
   0x7   : > { %p42_p0 = scmp.ne.s32.totalorder %s1116_s19, %s1112_s18  ;;  %p1448_p1 = scmp.eq.s32.totalorder %s1185_s22, 0 }
   0x8   : > { %p156_p3 = scmp.eq.s32.totalorder %s740_s23, 1  ;;  %p741_p5 = scmp.ge.s32.totalorder %s1124_s21, 1 }
   0x9   : > { %p1194_p4 = por %p1448_p1, %p42_p0  ;;  %p163_p7 = scmp.lt.s32.totalorder %s1124_s21, 3 }
   0xa   : > { %p1199_p6 = por %p156_p3, %p42_p0  ;;  %s1126_s27 = smov [#allocation5]  }
   0xb   : > { %s1451_s24 = scalar_select %p1194_p4, 1, 0 }
   0xc   : > { %s1452_s25 = scalar_select %p1199_p6, 1, 0 }
   0xd   : > { %p1204_p8 = pnand %p741_p5, %p163_p7  ;;  %s175_s28 = sshll.u32 %s1126_s27, 4  ;;  %s1208_s28 = int_to_ptr.vmem [resolvable:$true] %s175_s28 }
   0xe   : > { %s1127_s30 = smov [#allocation7]   ;;  %s968_s9 = scalar_lea.hbm %s1443_s1, 1024 }
   0xf   : > { %p887_p9 = pneg %p1204_p8  ;;  %s191_s6 = sshll.u32 %s1127_s30, 4  ;;  %s1219_s6 = int_to_ptr.vmem [resolvable:$true] %s191_s6 }
  0x10   : > { %p969_p12 = scmp.ne.s32.totalorder %s1443_s1, %s968_s9  ;;  %p975_p5 = scmp.lt.u32.totalorder %s968_s9, %s1443_s1 }
  0x11   : > { %p1215_p11 = pnand %p887_p9, %p1448_p1 }
  0x13   : > { %p970_p13 = pneg %p1215_p11 }
  0x15   : > { %p971_p0 = pnand %p970_p13, %p969_p12 }
  0x17   : > { %p972_p3 = pneg %p971_p0 }
  0x19   : > { %p977_p7 = pnand %p975_p5, %p972_p3 }
  0x1b   : > { %980 = shalt.err (!%p977_p7)
}
  0x1c   : > { %s981_s14 = scalar_lea.vmem %s1208_s28, 1024  ;;  %p989_p2 = scmp.lt.s32.totalorder %s1208_s28, %s1208_s28 }
  0x1d   : > { %p982_p9 = scmp.ne.s32.totalorder %s1208_s28, %s981_s14  ;;  %p990_p12 = scmp.lt.s32.totalorder %s981_s14, %s981_s14 }
  0x1f   : > { %p984_p10 = pnand %p982_p9, %p970_p13  ;;  %p991_p0 = por %p990_p12, %p989_p2 }
  0x21   : > { %p985_p1 = pneg %p984_p10 }
  0x23   : > { %p992_p6 = pnand %p991_p0, %p985_p1 }
  0x25   : > { %995 = shalt.err (!%p992_p6)
}
  0x26   : > { %s1128_s15 = smov 64   ;;  %s1129_s16 = smov 4  }
  0x27   : > { %890 = dma.hbm_to_vmem [thread:$0]  (!%p1215_p11), %s1443_s1, 1024, %s1208_s28, [#allocation6], %s1128_s15, %s1128_s15, %s1129_s16  }
  0x28   : > { %s996_s7 = scalar_lea.hbm %s1445_s3, 1024 }
  0x29   : > { %p997_p1 = scmp.ne.s32.totalorder %s1445_s3, %s996_s7  ;;  %p1003_p10 = scmp.lt.u32.totalorder %s996_s7, %s1445_s3 }
  0x2b   : > { %p999_p2 = pnand %p997_p1, %p970_p13 }
  0x2d   : > { %p1000_p6 = pneg %p999_p2 }
  0x2f   : > { %p1005_p3 = pnand %p1003_p10, %p1000_p6 }
  0x31   : > { %1008 = shalt.err (!%p1005_p3)
}
  0x32   : > { %s1009_s28 = scalar_lea.vmem %s1219_s6, 1024  ;;  %p1017_p12 = scmp.lt.s32.totalorder %s1219_s6, %s1219_s6 }
  0x33   : > { %p1010_p5 = scmp.ne.s32.totalorder %s1219_s6, %s1009_s28  ;;  %p1018_p0 = scmp.lt.s32.totalorder %s1009_s28, %s1009_s28 }
  0x35   : > { %p1012_p7 = pnand %p1010_p5, %p970_p13  ;;  %p1019_p1 = por %p1018_p0, %p1017_p12 }
  0x37   : > { %p1013_p9 = pneg %p1012_p7 }
  0x39   : > { %p1020_p2 = pnand %p1019_p1, %p1013_p9 }
  0x3b   : > { %1023 = shalt.err (!%p1020_p2)
}
  0x3c   : > { %893 = dma.hbm_to_vmem [thread:$0]  (!%p1215_p11), %s1445_s3, 1024, %s1219_s6, [#allocation6], %s1128_s15, %s1128_s15, %s1129_s16  }
  0x3d   : > { %s1280_s29 = sadd.s32 1, %s1124_s21   ;;  %s29_s14 = sadd.s32 1, %s1120_s20 }
  0x3e   : > { %s26_s17 = ssub.s32 %s1124_s21, %s1280_s29  ;;  %p36_p13 = scmp.ne.s32.totalorder %s1120_s20, %s1116_s19 }
  0x3f   : > { %p27_p6 = scmp.eq.s32.totalorder %s26_s17, 0  ;;  %p37_p10 = scmp.eq.s32.totalorder %s1124_s21, 0 }
  0x40   : > { %p1455_p3 = scmp.eq.s32.totalorder %s1185_s22, 1  ;;  %p904_p7 = scmp.lt.s32.totalorder %s1124_s21, 2 }
  0x41   : > { %s1296_s27 = scalar_select %p27_p6, %s1120_s20, %s29_s14  }
  0x42   : > { %p1290_p5 = por %p1455_p3, %p36_p13  ;;  %p38_p9 = por %p37_p10, %p36_p13 }
  0x43   : > { %s208_s30 = sand.u32 1, %s1120_s20   ;;  %s777_s6 = sshll.u32 %s1124_s21, 10 }
  0x44   : > { %s1456_s23 = scalar_select %p1290_p5, 1, 0 }
  0x45   : > { %s745_s7 = sshll.u32 %s208_s30, 6  ;;  %s1303_s10 = scalar_lea.hbm %s1442_s0, %s777_s6 }
  0x46   : > { %s212_s11 = scalar_lea.vmem [#allocation2], %s745_s7  ;;  %p1307_p11 = pnand %p904_p7, %p38_p9 }
  0x47   : > { %s220_s28 = sshll.u32 %s212_s11, 4  ;;  %s1311_s13 = scalar_lea.sflag [#allocation3], %s208_s30  ;;  %s1305_s28 = int_to_ptr.vmem [resolvable:$true] %s220_s28 }
  0x48   : > { %s1024_s14 = scalar_lea.hbm %s1303_s10, 1024  ;;  %p1026_p0 = pneg %p1307_p11 }
  0x49   : > { %p1025_p12 = scmp.ne.s32.totalorder %s1303_s10, %s1024_s14  ;;  %s1029_s6 = scalar_lea.hbm %s1442_s0, 2048 }
  0x4a   : > { %p1030_p13 = scmp.lt.u32.totalorder %s1303_s10, %s1442_s0  ;;  %p1031_p6 = scmp.lt.u32.totalorder %s1029_s6, %s1024_s14 }
  0x4b   : > { %p1027_p1 = pnand %p1026_p0, %p1025_p12  ;;  %p1033_p3 = scmp.lt.u32.totalorder %s1024_s14, %s1303_s10 }
  0x4c   : > { %p1032_p10 = por %p1031_p6, %p1030_p13 }
  0x4d   : > { %p1028_p2 = pneg %p1027_p1 }
  0x4e   : > { %p1034_p7 = por %p1033_p3, %p1032_p10 }
  0x50   : > { %p1035_p9 = pnand %p1034_p7, %p1028_p2 }
  0x52   : > { %1038 = shalt.err (!%p1035_p9)
}
  0x53   : > { %s1039_s30 = scalar_lea.vmem %s1305_s28, 1024  ;;  %s1130_s11 = smov [#allocation2]  }
  0x54   : > { %p1040_p12 = scmp.ne.s32.totalorder %s1305_s28, %s1039_s30  ;;  %s1044_s17 = sshll.u32 %s1130_s11, 4  ;;  %s1045_s17 = int_to_ptr.vmem [resolvable:$false] %s1044_s17 }
  0x55   : > { %s1046_s7 = scalar_lea.vmem %s1045_s17, 2048  ;;  %p1047_p4 = scmp.lt.s32.totalorder %s1305_s28, %s1045_s17 }
  0x56   : > { %p1042_p1 = pnand %p1040_p12, %p1026_p0  ;;  %p1048_p13 = scmp.lt.s32.totalorder %s1046_s7, %s1039_s30 }
  0x58   : > { %p1043_p5 = pneg %p1042_p1  ;;  %p1049_p6 = por %p1048_p13, %p1047_p4 }
  0x5a   : > { %p1050_p10 = pnand %p1049_p6, %p1043_p5 }
  0x5c   : > { %1053 = shalt.err (!%p1050_p10)
}
  0x5d   : > { %897 = dma.hbm_to_vmem [thread:$0]  (!%p1307_p11), %s1303_s10, 1024, %s1305_s28, %s1311_s13, %s1128_s15, %s1128_s15, %s1129_s16  }
  0x5e   : > { %232 = sbr.rel (%p1204_p8) target bundleno = 906 (0x38a), region = 40  ;;  %s1345_s14 = sand.u32 (!%p1204_p8), 1, %s1116_s19  }
  0x5f   : > { %s750_s6 = sshll.u32 (!%p1204_p8), %s1345_s14, 6  ;;  %s235_s8 = scalar_lea.sflag (!%p1204_p8), [#allocation3], %s1345_s14 }
  0x60   : > { %s1349_s9 = scalar_lea.vmem (!%p1204_p8), [#allocation2], %s750_s6  ;;  %p1458_p4 = scmp.ne.s32.totalorder (!%p1204_p8), %s1451_s24, 0 }
  0x65   : > { %1099 = dma.done.wait (%p1458_p4), %s235_s8, 1024  }
  0x66   : > { %1101 = vsyncadd (%p1458_p4), %s235_s8, 4294966272  ;;  %p1459_p5 = scmp.eq.s32.totalorder %s1185_s22, 0 }
  0x68   : > { %1103 = dma.done.wait (%p1459_p5), [#allocation6], 2048   ;;  %p1460_p8 = pmov %p1459_p5 }
  0x69   : > { %v1131_v0 = vmov 0.0   ;;  %vm1132_vm0 = vmmov 0   ;;  %v946_v1 = vld [vmem:[#allocation5] sm:$0xff]   ;;  %v947_v2 = vld [vmem:[#allocation5 + $0x8] sm:$0xff]   ;;  %v948_v3 = vld [vmem:[#allocation5 + $0x10] sm:$0xff]   ;;  %vm410_vm1 = vcmask 1041409  }
  0x6a   : > { %1105 = vsyncadd (%p1460_p8), [#allocation6], 4294965248  ;;  %835 = vmatprep.subr.bf16.mxu0 %v1131_v0  ;;  %851 = vmatprep.mubr.msk.bf16.mxu0 %vm1132_vm0, %v1131_v0  ;;  %v949_v4 = vld [vmem:[#allocation5 + $0x18] sm:$0xff]   ;;  %v779_v5 = vld [vmem:[%s1349_s9] sm:$0xff]   ;;  %vm412_vm2 = vcmask 1042434   ;;  %vm414_vm3 = vcmask 1043459  }
  0x6b   : > { %855 = vmatprep.subr.bf16.mxu1 %v1131_v0  ;;  %871 = vmatprep.mubr.msk.bf16.mxu1 %vm1132_vm0, %v1131_v0  ;;  %v810_v6 = vld [vmem:[%s1349_s9 + $0x8] sm:$0xff]   ;;  %v811_v7 = vld [vmem:[%s1349_s9 + $0x10] sm:$0xff]   ;;  %v780_v8 = vunpack.c.l.bf16 %v779_v5  ;;  %v781_v9 = vunpack.c.h.bf16 %v779_v5  ;;  %v812_v12 = vld [vmem:[%s1349_s9 + $0x18] sm:$0xff]   ;;  %vm416_vm4 = vcmask 1044484   ;;  %vm418_vm5 = vcmask 1045509   ;;  %s753_s10 = sshll.u32 %s1345_s14, 3 }
  0x6c   : > { %836 = vmatpush3.bf16.msra.mxu0 %v946_v1  ;;  %v784_v10 = vunpack.c.l.bf16 %v810_v6  ;;  %v785_v11 = vunpack.c.h.bf16 %v810_v6  ;;  %v813_v13 = vld [vmem:[%s1349_s9 + $0x20] sm:$0xff]   ;;  %v814_v14 = vld [vmem:[%s1349_s9 + $0x28] sm:$0xff]   ;;  %v788_v15 = vunpack.c.l.bf16 %v811_v7  ;;  %v789_v16 = vunpack.c.h.bf16 %v811_v7  ;;  %v815_v19 = vld [vmem:[%s1349_s9 + $0x30] sm:$0xff]   ;;  %s773_s28 = sshll.u32 %s1185_s22, 7  ;;  %s272_s12 = scalar_lea.vmem [#allocation8], %s753_s10 }
  0x6d   : > { %837 = vmatprep.subr.bf16.mxu0 %v1131_v0  ;;  %v792_v17 = vunpack.c.l.bf16 %v812_v12  ;;  %v793_v18 = vunpack.c.h.bf16 %v812_v12  ;;  %v816_v20 = vld [vmem:[%s1349_s9 + $0x38] sm:$0xff]   ;;  %v796_v21 = vunpack.c.l.bf16 %v813_v13  ;;  %v797_v22 = vunpack.c.h.bf16 %v813_v13  ;;  %v954_v25 = vld [vmem:[#allocation7] sm:$0xff]   ;;  %v955_v34 = vld [vmem:[#allocation7 + $0x8] sm:$0xff]   ;;  %s651_s13 = sshll.u32 %s272_s12, 4  ;;  %s1398_s17 = scalar_lea.hbm %s1447_s5, %s773_s28  ;;  %s1400_s13 = int_to_ptr.vmem [resolvable:$true] %s651_s13 }
  0x6e   : > { %v800_v23 = vunpack.c.l.bf16 %v814_v14  ;;  %v801_v24 = vunpack.c.h.bf16 %v814_v14  ;;  %v804_v26 = vunpack.c.l.bf16 %v815_v19  ;;  %v805_v27 = vunpack.c.h.bf16 %v815_v19  ;;  %856 = vmatpush3.bf16.msra.mxu1 %v954_v25  ;;  %v950_v35 = vld [vmem:[#allocation5 + $0x20] sm:$0xff]   ;;  %v956_v44 = vld [vmem:[#allocation7 + $0x10] sm:$0xff]   ;;  %v951_v45 = vld [vmem:[#allocation5 + $0x28] sm:$0xff]   ;;  %s638_s7 = scalar_lea.sflag [#allocation4], %s1345_s14  ;;  %s1054_s6 = scalar_lea.vmem %s1400_s13, 128 }
  0x6f   : > { %v808_v28 = vunpack.c.l.bf16 %v816_v20  ;;  %v809_v29 = vunpack.c.h.bf16 %v816_v20  ;;  %v307_v30 = vadd.f32 %v781_v9, %v780_v8  ;;  %v314_v31 = vadd.f32 %v785_v11, %v784_v10  ;;  %857 = vmatprep.subr.bf16.mxu1 %v1131_v0  ;;  %v957_v7 = vld [vmem:[#allocation7 + $0x18] sm:$0xff]   ;;  %v952_v8 = vld [vmem:[#allocation5 + $0x30] sm:$0xff]   ;;  %p1055_p11 = scmp.ne.s32.totalorder %s1400_s13, %s1054_s6  ;;  %p1461_p0 = scmp.ne.s32.totalorder %s1456_s23, 0 }
  0x70   : > { %838 = vmatpush3.bf16.msra.mxu0 %v947_v2  ;;  %v321_v32 = vadd.f32 %v789_v16, %v788_v15  ;;  %v328_v33 = vadd.f32 %v793_v18, %v792_v17  ;;  %v335_v36 = vadd.f32 %v797_v22, %v796_v21  ;;  %v342_v37 = vadd.f32 %v801_v24, %v800_v23  ;;  %v953_v25 = vld [vmem:[#allocation5 + $0x38] sm:$0xff]   ;;  %s1133_s22 = smov [#allocation8]  }
  0x71   : > { %839 = vmatprep.subr.bf16.mxu0 %v1131_v0  ;;  %v349_v38 = vadd.f32 %v805_v27, %v804_v26  ;;  %v356_v39 = vadd.f32 %v809_v29, %v808_v28  ;;  %v308_v40 = vrot.slane %v307_v30, 4  ;;  %v315_v41 = vrot.slane %v314_v31, 4  ;;  %p1056_p2 = pnand %p1055_p11, %p1461_p0  ;;  %s1058_s8 = sshll.u32 %s1133_s22, 4  ;;  %s1059_s8 = int_to_ptr.vmem [resolvable:$false] %s1058_s8 }
  0x72   : > { %v322_v42 = vrot.slane %v321_v32, 4  ;;  %v329_v43 = vrot.slane %v328_v33, 4  ;;  %v336_v46 = vrot.slane %v335_v36, 4  ;;  %v343_v47 = vrot.slane %v342_v37, 4  ;;  %858 = vmatpush3.bf16.msra.mxu1 %v955_v34  ;;  %s1060_s9 = scalar_lea.vmem %s1059_s8, 256  ;;  %p1061_p7 = scmp.lt.s32.totalorder %s1400_s13, %s1059_s8 }
  0x73   : > { %v350_v48 = vrot.slane %v349_v38, 4  ;;  %v357_v49 = vrot.slane %v356_v39, 4  ;;  %v309_v50 = vadd.f32 %v308_v40, %v307_v30  ;;  %v316_v51 = vadd.f32 %v315_v41, %v314_v31  ;;  %859 = vmatprep.subr.bf16.mxu1 %v1131_v0  ;;  %p1057_p3 = pneg %p1056_p2  ;;  %p1062_p9 = scmp.lt.s32.totalorder %s1060_s9, %s1054_s6 }
  0x74   : > { %840 = vmatpush3.bf16.msra.mxu0 %v948_v3  ;;  %v323_v52 = vadd.f32 %v322_v42, %v321_v32  ;;  %v330_v53 = vadd.f32 %v329_v43, %v328_v33  ;;  %v337_v54 = vadd.f32 %v336_v46, %v335_v36  ;;  %v344_v55 = vadd.f32 %v343_v47, %v342_v37 }
  0x75   : > { %841 = vmatprep.subr.bf16.mxu0 %v1131_v0  ;;  %v351_v56 = vadd.f32 %v350_v48, %v349_v38  ;;  %v358_v57 = vadd.f32 %v357_v49, %v356_v39  ;;  %v310_v58 = vrot.slane %v309_v50, 2  ;;  %v317_v59 = vrot.slane %v316_v51, 2  ;;  %p1063_p12 = por %p1062_p9, %p1061_p7 }
  0x76   : > { %v324_v60 = vrot.slane %v323_v52, 2  ;;  %v331_v61 = vrot.slane %v330_v53, 2  ;;  %v338_v62 = vrot.slane %v337_v54, 2  ;;  %v345_v63 = vrot.slane %v344_v55, 2  ;;  %860 = vmatpush3.bf16.msra.mxu1 %v956_v44 }
  0x77   : > { %v352_v1 = vrot.slane %v351_v56, 2  ;;  %v359_v2 = vrot.slane %v358_v57, 2  ;;  %v311_v3 = vadd.f32 %v310_v58, %v309_v50  ;;  %861 = vmatprep.subr.bf16.mxu1 %v1131_v0  ;;  %vm420_vm6 = vcmask 1046534   ;;  %v754_v58 = vld [vmem:[%s1444_s2] ss:$0 sm:$0xff]  ;;  %p1064_p1 = pnand %p1063_p12, %p1057_p3 }
  0x78   : > { %842 = vmatpush3.bf16.msra.mxu0 %v949_v4  ;;  %v318_v4 = vadd.f32 %v317_v59, %v316_v51  ;;  %v325_v5 = vadd.f32 %v324_v60, %v323_v52  ;;  %v332_v6 = vadd.f32 %v331_v61, %v330_v53  ;;  %v339_v9 = vadd.f32 %v338_v62, %v337_v54  ;;  %v958_v54 = vld [vmem:[#allocation7 + $0x20] sm:$0xff]  }
  0x79   : > { %843 = vmatprep.subr.bf16.mxu0 %v1131_v0  ;;  %v346_v10 = vadd.f32 %v345_v63, %v344_v55  ;;  %v353_v11 = vadd.f32 %v352_v1, %v351_v56  ;;  %v360_v12 = vadd.f32 %v359_v2, %v358_v57  ;;  %v312_v13 = vrot.slane %v311_v3, 1  ;;  %v959_v55 = vld [vmem:[#allocation7 + $0x28] sm:$0xff]   ;;  %v960_v56 = vld [vmem:[#allocation7 + $0x30] sm:$0xff]   ;;  %v961_v57 = vld [vmem:[#allocation7 + $0x38] sm:$0xff]  }
  0x7a   : > { %v319_v14 = vrot.slane %v318_v4, 1  ;;  %v326_v15 = vrot.slane %v325_v5, 1  ;;  %v333_v16 = vrot.slane %v332_v6, 1  ;;  %v340_v17 = vrot.slane %v339_v9, 1  ;;  %862 = vmatpush3.bf16.msra.mxu1 %v957_v7 }
  0x7b   : > { %v347_v18 = vrot.slane %v346_v10, 1  ;;  %v354_v19 = vrot.slane %v353_v11, 1  ;;  %v361_v20 = vrot.slane %v360_v12, 1  ;;  %v313_v21 = vadd.f32 %v312_v13, %v311_v3  ;;  %863 = vmatprep.subr.bf16.mxu1 %v1131_v0 }
  0x7c   : > { %844 = vmatpush3.bf16.msra.mxu0 %v950_v35  ;;  %v320_v22 = vadd.f32 %v319_v14, %v318_v4  ;;  %v327_v23 = vadd.f32 %v326_v15, %v325_v5  ;;  %v334_v24 = vadd.f32 %v333_v16, %v332_v6  ;;  %v341_v26 = vadd.f32 %v340_v17, %v339_v9 }
  0x7d   : > { %845 = vmatprep.subr.bf16.mxu0 %v1131_v0  ;;  %v348_v27 = vadd.f32 %v347_v18, %v346_v10  ;;  %v355_v28 = vadd.f32 %v354_v19, %v353_v11  ;;  %v362_v29 = vadd.f32 %v361_v20, %v360_v12  ;;  %v363_v30 = vpack.c.bf16 %v313_v21, %v313_v21 }
  0x7e   : > { %v364_v31 = vpack.c.bf16 %v320_v22, %v320_v22  ;;  %v365_v32 = vpack.c.bf16 %v327_v23, %v327_v23  ;;  %v366_v33 = vpack.c.bf16 %v334_v24, %v334_v24  ;;  %v367_v34 = vpack.c.bf16 %v341_v26, %v341_v26  ;;  %864 = vmatpush3.bf16.msra.mxu1 %v958_v54 }
  0x7f   : > { %v368_v35 = vpack.c.bf16 %v348_v27, %v348_v27  ;;  %v369_v36 = vpack.c.bf16 %v355_v28, %v355_v28  ;;  %v370_v37 = vpack.c.bf16 %v362_v29, %v362_v29  ;;  %v402_v38 = vunpack.c.l.b16 %v363_v30  ;;  %865 = vmatprep.subr.bf16.mxu1 %v1131_v0 }
  0x80   : > { %846 = vmatpush3.bf16.msra.mxu0 %v951_v45  ;;  %v403_v39 = vunpack.c.l.b16 %v364_v31  ;;  %v404_v40 = vunpack.c.l.b16 %v365_v32  ;;  %v405_v41 = vunpack.c.l.b16 %v366_v33  ;;  %v406_v42 = vunpack.c.l.b16 %v367_v34 }
  0x81   : > { %847 = vmatprep.subr.bf16.mxu0 %v1131_v0  ;;  %v407_v43 = vunpack.c.l.b16 %v368_v35  ;;  %v408_v45 = vunpack.c.l.b16 %v369_v36  ;;  %v409_v47 = vunpack.c.l.b16 %v370_v37  ;;  %vm422_vm7 = vcmask 1047559  }
  0x82   : > { %v411_v44 = vsel %vm410_vm1, %v403_v39, %v402_v38  ;;  %866 = vmatpush3.bf16.msra.mxu1 %v959_v55 }
  0x83   : > { %v413_v46 = vsel %vm412_vm2, %v404_v40, %v411_v44  ;;  %867 = vmatprep.subr.bf16.mxu1 %v1131_v0 }
  0x84   : > { %848 = vmatpush3.bf16.msra.mxu0 %v952_v8  ;;  %v415_v48 = vsel %vm414_vm3, %v405_v41, %v413_v46 }
  0x85   : > { %849 = vmatprep.subr.bf16.mxu0 %v1131_v0  ;;  %v417_v49 = vsel %vm416_vm4, %v406_v42, %v415_v48 }
  0x86   : > { %v419_v50 = vsel %vm418_vm5, %v407_v43, %v417_v49  ;;  %868 = vmatpush3.bf16.msra.mxu1 %v960_v56 }
  0x87   : > { %v421_v51 = vsel %vm420_vm6, %v408_v45, %v419_v50  ;;  %869 = vmatprep.subr.bf16.mxu1 %v1131_v0  ;;  %v763_v0 = vld [vmem:[%s1446_s4] ss:$0 sm:$0xff] }
  0x88   : > { %850 = vmatpush3.bf16.msra.mxu0 %v953_v25  ;;  %v423_v52 = vsel %vm422_vm7, %v409_v47, %v421_v51 }
  0x89   : > { %v424_v53 = vpack.c.b16 %v423_v52, %v423_v52 }
  0x8a   : > { %870 = vmatpush3.bf16.msra.mxu1 %v961_v57 }
  0x8b   : > { %852 = vmatmul.mubr.bf16.vlgmr.msra.gmra.mrb[0].mxu0 %v424_v53 }
 0x15e   : > { %v508_v59 = vpop.f32.mrb[0].mxu0 }
 0x15f   : > { %v509_v60 = vadd.f32 %v754_v58, %v508_v59  ;;  %v853_v61 = vpop.f32.mrb[1].mxu0 }
 0x160   : > { %v511_v62 = vpop.f32.mrb[2].mxu0 }
 0x161   : > { %962 = vtanh.f32 %v509_v60  ;;  %v854_v63 = vpop.f32.mrb[3].mxu0 }
 0x16b   : > { %v963_v1 = vpop.eup %962 }
 0x16c   : > { %v515_v2 = vpack.c.bf16 %v963_v1, %v963_v1 }
 0x16e   : > { %872 = vmatmul.mubr.bf16.vlgmr.msra.gmra.mrb[0].mxu1 %v515_v2 }
 0x241   : > { %v621_v3 = vpop.f32.mrb[0].mxu1 }
 0x242   : > { %v622_v4 = vadd.f32 %v763_v0, %v621_v3  ;;  %v873_v5 = vpop.f32.mrb[1].mxu1 }
 0x243   : > { %v624_v6 = vpop.f32.mrb[2].mxu1 }
 0x244   : > { %627 = vmax.xlane.f32.xlu0 %v622_v4  ;;  %v874_v7 = vpop.f32.mrb[3].mxu1 }
 0x2d1   : > { %v628_v8 = vpop.xlane.xlu0 %627 }
 0x2d2   : > { %v629_v9 = vsub.f32 %v622_v4, %v628_v8 }
 0x2d4   : > { %v630_v10 = vmul.f32 1.442695, %v629_v9 }
 0x2d6   : > { %964 = vpow2.f32 %v630_v10 }
 0x2e0   : > { %v965_v11 = vpop.eup %964 }
 0x2e1   : > { %632 = vadd.xlane.f32.xlu0 %v965_v11 }
 0x36e   : > { %v633_v12 = vpop.xlane.xlu0 %632 }
 0x36f   : > { %966 = vrcp.f32 %v633_v12 }
 0x379   : > { %v967_v13 = vpop.eup %966 }
 0x37a   : > { %v635_v14 = vmul.f32 %v967_v13, %v965_v11 }
 0x37c   : > { %636 = vst [vmem:[%s272_s12] sm:$0xff] %v635_v14 }
 0x37d   : > { %1067 = shalt.err (!%p1064_p1)
}
 0x37e   : > { %s1068_s14 = scalar_lea.hbm %s1398_s17, 128  ;;  %s1072_s15 = scalar_lea.hbm %s1447_s5, 256 }
 0x37f   : > { %p1069_p13 = scmp.ne.s32.totalorder %s1398_s17, %s1068_s14  ;;  %p1073_p4 = scmp.lt.u32.totalorder %s1398_s17, %s1447_s5 }
 0x380   : > { %p1074_p5 = scmp.lt.u32.totalorder %s1072_s15, %s1068_s14  ;;  %p1076_p11 = scmp.lt.u32.totalorder %s1068_s14, %s1398_s17 }
 0x381   : > { %p1070_p6 = pnand %p1069_p13, %p1461_p0 }
 0x382   : > { %p1075_p8 = por %p1074_p5, %p1073_p4 }
 0x383   : > { %p1071_p10 = pneg %p1070_p6 }
 0x384   : > { %p1077_p2 = por %p1076_p11, %p1075_p8 }
 0x386   : > { %p1078_p3 = pnand %p1077_p2, %p1071_p10 }
 0x388   : > { %1081 = shalt.err (!%p1078_p3)
}
 0x389   : > { %885 = dma.vmem_to_hbm [thread:$0]  (%p1461_p0), %s1400_s13, 128, %s1398_s17, %s638_s7  }
 0x38a PF: > { %s663_s28 = sand.u32 1, %s1112_s18   ;;  %p1462_p7 = scmp.ne.s32.totalorder %s1452_s25, 0 }
 0x38b   : > { %p1463_p9 = scmp.ge.s32.totalorder %s1124_s21, 2  ;;  %s664_s12 = scalar_lea.sflag [#allocation4], %s663_s28 }
 0x38d   : > { %p899_p12 = pnand %p1463_p9, %p1462_p7 }
 0x38f   : > { %1107 = dma.done.wait (!%p899_p12), %s664_s12, 128  }
 0x390   : > { %1109 = vsyncadd (!%p899_p12), %s664_s12, 4294967168  ;;  %p19_p1 = scmp.ge.s32.totalorder %s1280_s29, 4   ;;  %s1464_s18 = smov %s1116_s19 }
 0x391   : > { %s1465_s19 = smov %s1120_s20  ;;  %s1466_s20 = smov %s1296_s27 }
 0x392   : > { %s1467_s21 = smov %s1280_s29  ;;  %21 = sbr.rel (!%p19_p1) target bundleno = 6 (0x6), region = 93 }
 0x399   :  { %669 = vsyncpa [#allocation3], 1 }
 0x39a   :  { %671 = vsyncpa [#allocation3 + $0x1], 1 }
 0x39b   :  { %672 = vsyncpa [#allocation6], 1 }
 0x39c   :  { %673 = vsyncpa [#allocation4], 1 }
 0x39d   :  { %675 = vsyncpa [#allocation4 + $0x1], 1 }

</bundles_post_ra>
